<compile_context>
chip_gen: v5e
topology: v5e:2x2
jax: 0.10.0
libtpu: 0.0.40
codegen_flags: <defaults>
</compile_context>

<pallas_src>
import math

import jax
import jax.numpy as jnp
from jax.experimental import pallas as pl
from jax.experimental.pallas import tpu as pltpu

_LANE = 128
_SUBLANE = 8
_TILE_ELEMS = _LANE * _SUBLANE  # 1024


def _reparam_kernel(mean_ref, logstd_ref, eps_ref, z_ref):
    # mean_ref / logstd_ref: (RT, 128)     -- dense (8,128)-tiled stats slab
    # eps_ref  / z_ref:      (K, RT, 128)  -- all K sampling trials
    # exp is computed once per element; the FMA broadcasts over the K slices.
    std = jnp.exp(0.5 * logstd_ref[...])
    z_ref[...] = mean_ref[...][None, :, :] + std[None, :, :] * eps_ref[...]


def _pick_row_tile(R, K, itemsize=4, vmem_budget_bytes=8 << 20, min_steps=8):
    """Largest RT (multiple of 8, dividing R) within the VMEM budget, while
    keeping several pipelined grid steps when the problem allows it.

    R is guaranteed to be a multiple of 8 by the wrapper's padding.
    Per-step single-buffered bytes = (2 + 2K) * RT * 128 * itemsize
    (mean + logstd + K eps + K z blocks); double-buffering doubles that.
    """
    per_row_bytes = (2 + 2 * K) * _LANE * itemsize
    max_rt_vmem = max(_SUBLANE,
                      (vmem_budget_bytes // (2 * per_row_bytes))
                      // _SUBLANE * _SUBLANE)
    # Prefer >= min_steps grid steps (>= 2 also lets v7x use both TCs).
    desired_steps = max(1, min(min_steps, R // _SUBLANE))
    max_rt_steps = max(_SUBLANE, (R // desired_steps) // _SUBLANE * _SUBLANE)
    cap = min(max_rt_vmem, max_rt_steps, R)

    best = _SUBLANE
    rt = _SUBLANE
    while rt <= cap:
        if R % rt == 0:
            best = rt
        rt += _SUBLANE
    return best


def reparametrize_iw(z_mean, z_logstd, epss):
    """zs[k] = z_mean + exp(0.5 * z_logstd) * epss[k], computed in Pallas.

    Args:
      z_mean:   latent mean, any shape S (float32)
      z_logstd: latent log-std, shape S (float32)
      epss:     standard-normal draws, shape (K,) + S (float32)
    Returns:
      (zs, epss) with zs of shape (K,) + S
    """
    K = epss.shape[0]
    latent_shape = z_mean.shape
    assert z_logstd.shape == latent_shape
    assert epss.shape == (K,) + latent_shape

    N = math.prod(latent_shape)
    # Pad to a multiple of 8*128 so the slab re-laid as (R, 128) has R % 8 == 0
    # and every block is a dense, unmasked (8,128) tile.
    N_pad = ((N + _TILE_ELEMS - 1) // _TILE_ELEMS) * _TILE_ELEMS
    pad = N_pad - N

    mean_flat = z_mean.reshape(N)
    logstd_flat = z_logstd.reshape(N)
    eps_flat = epss.reshape(K, N)
    if pad:
        mean_flat = jnp.pad(mean_flat, (0, pad))
        logstd_flat = jnp.pad(logstd_flat, (0, pad))
        eps_flat = jnp.pad(eps_flat, ((0, 0), (0, pad)))

    R = N_pad // _LANE
    mean2 = mean_flat.reshape(R, _LANE)
    logstd2 = logstd_flat.reshape(R, _LANE)
    eps3 = eps_flat.reshape(K, R, _LANE)

    RT = _pick_row_tile(R, K, itemsize=jnp.dtype(z_mean.dtype).itemsize)
    grid = (R // RT,)

    cost = pl.CostEstimate(
        flops=2 * K * N_pad + N_pad,          # K FMAs per element + 0.5*logstd
        transcendentals=N_pad,                # exp once per latent element
        bytes_accessed=(2 * K * N_pad + 2 * N_pad) * 4,
    )

    zs3 = pl.pallas_call(
        _reparam_kernel,
        out_shape=jax.ShapeDtypeStruct((K, R, _LANE), z_mean.dtype),
        grid_spec=pltpu.PrefetchScalarGridSpec(
            num_scalar_prefetch=0,
            grid=grid,
            in_specs=[
                pl.BlockSpec((RT, _LANE), lambda i: (i, 0)),      # z_mean
                pl.BlockSpec((RT, _LANE), lambda i: (i, 0)),      # z_logstd
                pl.BlockSpec((K, RT, _LANE), lambda i: (0, i, 0)),  # eps
            ],
            out_specs=pl.BlockSpec((K, RT, _LANE), lambda i: (0, i, 0)),
        ),
        compiler_params=pltpu.CompilerParams(
            dimension_semantics=("parallel",),
        ),
        cost_estimate=cost,
    )(mean2, logstd2, eps3)

    zs_flat = zs3.reshape(K, N_pad)
    if pad:
        zs_flat = zs_flat[:, :N]
    zs = zs_flat.reshape((K,) + latent_shape)
    return zs, epss


if __name__ == "__main__":
    # Small shapes consistent with a latent-vector reparameterization.
    K = 5          # number of sampling trials (module default k=5)
    B = 4          # batch
    D = 32         # latent dimension

    key = jax.random.PRNGKey(0)
    k_mean, k_logstd, k_eps = jax.random.split(key, 3)

    z_mean = jax.random.normal(k_mean, (B, D), dtype=jnp.float32)
    z_logstd = 0.1 * jax.random.normal(k_logstd, (B, D), dtype=jnp.float32)
    # torch.randn_like(z_std) for each of the k trials -> stacked (K, B, D)
    epss = jax.random.normal(k_eps, (K, B, D), dtype=jnp.float32)

    zs, epss_out = reparametrize_iw(z_mean, z_logstd, epss)
    zs = jax.block_until_ready(zs)

    # Reference check in plain JAX.
    ref = z_mean[None] + jnp.exp(0.5 * z_logstd)[None] * epss
    assert zs.shape == (K, B, D)
    assert jnp.allclose(zs, ref, atol=1e-6, rtol=1e-6)

    print("KERNEL_OK")
</pallas_src>

<mosaic_0001>
module attributes {stable_mosaic.version = 11 : i64} {
  func.func @_reparam_kernel(%arg0: i32, %arg1: memref<8x128xf32, #tpu.memory_space<vmem>>, %arg2: memref<8x128xf32, #tpu.memory_space<vmem>>, %arg3: memref<5x8x128xf32, #tpu.memory_space<vmem>>, %arg4: memref<5x8x128xf32, #tpu.memory_space<vmem>>) attributes {dimension_semantics = [#tpu.dimension_semantics<parallel>], iteration_bounds = array<i64: 1>, scalar_prefetch = 0 : i64, scratch_operands = 0 : i64, tpu.core_type = #tpu.core_type<tc>, window_params = [{transform_indices = @transform_0, window_bounds = array<i64: 8, 128>}, {transform_indices = @transform_1, window_bounds = array<i64: 8, 128>}, {transform_indices = @transform_2, window_bounds = array<i64: 5, 8, 128>}, {transform_indices = @transform_3, window_bounds = array<i64: 5, 8, 128>}]} {
    %c0 = arith.constant 0 : index
    %c0_0 = arith.constant 0 : index
    %0 = vector.load %arg2[%c0, %c0_0] : memref<8x128xf32, #tpu.memory_space<vmem>>, vector<8x128xf32>
    %cst = arith.constant 5.000000e-01 : f32
    %1 = vector.broadcast %cst : f32 to vector<8x128xf32>
    %2 = arith.mulf %1, %0 : vector<8x128xf32>
    %3 = math.exp %2 : vector<8x128xf32>
    %c0_1 = arith.constant 0 : index
    %c0_2 = arith.constant 0 : index
    %4 = vector.load %arg1[%c0_1, %c0_2] : memref<8x128xf32, #tpu.memory_space<vmem>>, vector<8x128xf32>
    %5 = vector.shape_cast %4 : vector<8x128xf32> to vector<1x8x128xf32>
    %6 = vector.shape_cast %3 : vector<8x128xf32> to vector<1x8x128xf32>
    %c0_3 = arith.constant 0 : index
    %c0_4 = arith.constant 0 : index
    %c0_5 = arith.constant 0 : index
    %7 = vector.load %arg3[%c0_3, %c0_4, %c0_5] : memref<5x8x128xf32, #tpu.memory_space<vmem>>, vector<5x8x128xf32>
    %8 = vector.broadcast %6 : vector<1x8x128xf32> to vector<5x8x128xf32>
    %9 = arith.mulf %8, %7 : vector<5x8x128xf32>
    %10 = vector.broadcast %5 : vector<1x8x128xf32> to vector<5x8x128xf32>
    %11 = arith.addf %10, %9 : vector<5x8x128xf32>
    %c0_6 = arith.constant 0 : index
    %c0_7 = arith.constant 0 : index
    %c0_8 = arith.constant 0 : index
    %12 = vector.load %arg4[%c0_6, %c0_7, %c0_8] : memref<5x8x128xf32, #tpu.memory_space<vmem>>, vector<5x8x128xf32>
    tpu.vector_store %arg4[%c0_6, %c0_7, %c0_8], %11 {strides = array<i32>} : memref<5x8x128xf32, #tpu.memory_space<vmem>>, vector<5x8x128xf32>,
    return
  }
  func.func @transform_0(%arg0: i32) -> (i32, i32) {
    %c0_i32 = arith.constant 0 : i32
    %c0_i32_0 = arith.constant 0 : i32
    return %arg0, %c0_i32 : i32, i32
  }
  func.func @transform_1(%arg0: i32) -> (i32, i32) {
    %c0_i32 = arith.constant 0 : i32
    %c0_i32_0 = arith.constant 0 : i32
    return %arg0, %c0_i32 : i32, i32
  }
  func.func @transform_2(%arg0: i32) -> (i32, i32, i32) {
    %c0_i32 = arith.constant 0 : i32
    %c0_i32_0 = arith.constant 0 : i32
    %c0_i32_1 = arith.constant 0 : i32
    return %c0_i32, %arg0, %c0_i32_0 : i32, i32, i32
  }
  func.func @transform_3(%arg0: i32) -> (i32, i32, i32) {
    %c0_i32 = arith.constant 0 : i32
    %c0_i32_0 = arith.constant 0 : i32
    %c0_i32_1 = arith.constant 0 : i32
    return %c0_i32, %arg0, %c0_i32_0 : i32, i32, i32
  }
}

</mosaic_0001>

<bundles_post_ra>
// kernel: tpu_custom_call.1
= control target key start
LH: loop header
LB: loop body
LE: loop exit
PB: predicated region body
PF: predicated region fallthrough
CT: control target
= control target key end

     0   :  { %8 = vsyncpa [#allocation3], 0  ;;  %s257_s0 = inlined_call_operand.hbm [shape: f32[8,128], index: 0, kind: input, shape index: {}]   ;;  %s258_s1 = inlined_call_operand.hbm [shape: f32[8,128], index: 1, kind: input, shape index: {}]   ;;  %s259_s2 = inlined_call_operand.hbm [shape: f32[5,8,128], index: 2, kind: input, shape index: {}]   ;;  %s260_s3 = inlined_call_operand.hbm [shape: f32[5,8,128], index: 3, kind: output, shape index: {}]  }
   0x1   :  { %9 = vsyncpa [#allocation6], 0  ;;  %s27_s14 = sshll.u32 %s258_s1, 4  ;;  %s28_s14 = int_to_ptr.hbm [resolvable:$true] %s27_s14 }
   0x2   :  { %10 = vsyncpa [#allocation4], 0  ;;  %s213_s15 = smov [#allocation5]   ;;  %s16_s19 = sshll.u32 %s257_s0, 4  ;;  %s17_s19 = int_to_ptr.hbm [resolvable:$true] %s16_s19 }
   0x3   :  { %s29_s16 = sshll.u32 %s213_s15, 4  ;;  %s214_s20 = smov [#allocation2]   ;;  %s30_s16 = int_to_ptr.vmem [resolvable:$true] %s29_s16 }
   0x4   :  { %32 = dma.hbm_to_vmem [thread:$0]  %s28_s14, 128, %s30_s16, [#allocation6]  }
   0x5   :  { %s18_s21 = sshll.u32 %s214_s20, 4  ;;  %s37_s24 = sshll.u32 %s259_s2, 4  ;;  %s19_s21 = int_to_ptr.vmem [resolvable:$true] %s18_s21  ;;  %s38_s24 = int_to_ptr.hbm [resolvable:$true] %s37_s24 }
   0x6   :  { %21 = dma.hbm_to_vmem [thread:$0]  %s17_s19, 128, %s19_s21, [#allocation3]  }
   0x7   :  { %s215_s1 = smov [#allocation7]   ;;  %s216_s26 = smov 128  }
   0x8   :  { %s39_s25 = sshll.u32 %s215_s1, 4  ;;  %s217_s27 = smov 8   ;;  %s40_s25 = int_to_ptr.vmem [resolvable:$true] %s39_s25 }
   0x9   :  { %45 = dma.hbm_to_vmem [thread:$0]  %s38_s24, 640, %s40_s25, [#allocation6], %s216_s26, %s216_s26, %s217_s27  }
   0xa   :  { %207 = dma.done.wait [#allocation3], 128  }
   0xb   :  { %208 = vsyncadd [#allocation3], 4294967168 }
   0xc   :  { %209 = dma.done.wait [#allocation6], 768  }
   0xd   :  { %210 = vsyncadd [#allocation6], 4294966528  ;;  %v58_v0 = vld [vmem:[#allocation5] sm:$0xff]  ;;  %v63_v3 = vld [vmem:[#allocation7] sm:$0xff]  ;;  %s218_s0 = smov [#allocation8]   ;;  %s89_s30 = sshll.u32 %s260_s3, 4  ;;  %s90_s30 = int_to_ptr.hbm [resolvable:$true] %s89_s30 }
   0xe   :  { %v59_v1 = vmul.f32 0.5, %v58_v0  ;;  %v64_v4 = vld [vmem:[#allocation7 + $0x8] sm:$0xff]  ;;  %v65_v5 = vld [vmem:[#allocation7 + $0x10] sm:$0xff]  ;;  %v66_v6 = vld [vmem:[#allocation7 + $0x18] sm:$0xff]  ;;  %s87_s2 = sshll.u32 %s218_s0, 4  ;;  %s88_s2 = int_to_ptr.vmem [resolvable:$true] %s87_s2 }
   0xf   :  { %v67_v7 = vld [vmem:[#allocation7 + $0x20] sm:$0xff]  ;;  %v62_v9 = vld [vmem:[#allocation2] sm:$0xff] }
  0x10   :  { %v60_v2 = vmul.f32 1.442695, %v59_v1 }
  0x12   :  { %109 = vpow2.f32 %v60_v2 }
  0x18   :  { %v110_v8 = vpop.eup %109 }
  0x19   :  { %v68_v10 = vmul.f32 %v110_v8, %v63_v3  ;;  %v69_v11 = vmul.f32 %v110_v8, %v64_v4  ;;  %v70_v12 = vmul.f32 %v110_v8, %v65_v5  ;;  %v71_v13 = vmul.f32 %v110_v8, %v66_v6 }
  0x1a   :  { %v72_v14 = vmul.f32 %v110_v8, %v67_v7 }
  0x1b   :  { %v73_v15 = vadd.f32 %v68_v10, %v62_v9  ;;  %v74_v16 = vadd.f32 %v69_v11, %v62_v9  ;;  %v75_v17 = vadd.f32 %v70_v12, %v62_v9  ;;  %v76_v18 = vadd.f32 %v71_v13, %v62_v9 }
  0x1c   :  { %v77_v19 = vadd.f32 %v72_v14, %v62_v9 }
  0x1d   :  { %78 = vst [vmem:[#allocation8] sm:$0xff] %v73_v15 }
  0x1e   :  { %79 = vst [vmem:[#allocation8 + $0x8] sm:$0xff] %v74_v16 }
  0x1f   :  { %80 = vst [vmem:[#allocation8 + $0x10] sm:$0xff] %v75_v17 }
  0x20   :  { %81 = vst [vmem:[#allocation8 + $0x18] sm:$0xff] %v76_v18 }
  0x21   :  { %82 = vst [vmem:[#allocation8 + $0x20] sm:$0xff] %v77_v19 }
  0x22   :  { %95 = dma.vmem_to_hbm [thread:$0]  %s88_s2, 640, %s90_s30, [#allocation4], %s216_s26, %s216_s26, %s217_s27  }
  0x23   :  { %211 = dma.done.wait [#allocation4], 640  }
  0x24   :  { %212 = vsyncadd [#allocation4], 4294966656 }
  0x25   :  { %100 = vsyncpa [#allocation3], 1 }
  0x26   :  { %101 = vsyncpa [#allocation6], 1 }
  0x27   :  { %102 = vsyncpa [#allocation4], 1 }

</bundles_post_ra>
